<compile_context>
chip_gen: v5e
topology: v5e:2x2
jax: 0.10.0
libtpu: 0.0.40
codegen_flags: <defaults>
</compile_context>

<pallas_src>
import functools

import jax
import jax.numpy as jnp
from jax.experimental import pallas as pl
from jax.experimental.pallas import tpu as pltpu

_LANE = 128


def _layernorm_kernel(x_ref, gamma_ref, beta_ref, o_ref, *, eps: float,
                      valid_hidden: int):
    # x_ref: (tile_rows, padded_hidden); gamma/beta: (1, padded_hidden)
    x = x_ref[...].astype(jnp.float32)
    padded_hidden = x.shape[-1]

    if valid_hidden < padded_hidden:
        lane = jax.lax.broadcasted_iota(jnp.int32, x.shape, dimension=x.ndim - 1)
        xm = jnp.where(lane < valid_hidden, x, 0.0)
    else:
        xm = x

    n = jnp.float32(valid_hidden)
    s1 = jnp.sum(xm, axis=-1, keepdims=True)
    s2 = jnp.sum(xm * xm, axis=-1, keepdims=True)
    mean = s1 / n
    # torch.var default is unbiased (divide by n-1); the reference module uses
    # torch.var(...), so we keep the Bessel correction here.
    denom = jnp.float32(max(valid_hidden - 1, 1))
    var = (s2 - n * mean * mean) / denom
    var = jnp.maximum(var, 0.0)  # guard tiny negative from cancellation

    inv_std = jax.lax.rsqrt(var + jnp.float32(eps))
    x_norm = (x - mean) * inv_std

    gamma = gamma_ref[...].astype(jnp.float32)
    beta = beta_ref[...].astype(jnp.float32)
    o_ref[...] = (gamma * x_norm + beta).astype(o_ref.dtype)


def _round_up(x: int, m: int) -> int:
    return ((x + m - 1) // m) * m


def layer_norm(x: jax.Array, gamma: jax.Array, beta: jax.Array,
               eps: float) -> jax.Array:
    """LayerNorm over the last axis of x. gamma/beta have shape (hidden,)."""
    orig_shape = x.shape
    hidden = orig_shape[-1]
    rows = 1
    for d in orig_shape[:-1]:
        rows *= d

    dtype = x.dtype
    itemsize = jnp.dtype(dtype).itemsize
    sub = 8 if itemsize >= 4 else 16          # sublane alignment (f32 / packed)
    padded_hidden = _round_up(hidden, _LANE)  # lane-dense stores

    # --- VMEM-aware row-tile selection (kernel is purely HBM-bandwidth bound) ---
    try:
        vmem_bytes = int(pltpu.get_tpu_info().vmem_capacity_bytes)
    except Exception:
        vmem_bytes = 64 * 1024 * 1024  # conservative (v7x-sized) fallback

    row_bytes = padded_hidden * itemsize
    # ~8 MiB input blocks on 128 MiB VMEM chips (v5e/v6e), ~4 MiB on v7x (64 MiB).
    target_block = (8 << 20) if vmem_bytes >= (128 << 20) else (4 << 20)
    tile = max(sub, (target_block // max(row_bytes, 1)) // sub * sub)

    padded_rows_min = _round_up(rows, sub)
    # Keep the grid >= 2 when there is enough work (lets Mosaic split the row
    # loop across both TensorCores on v7x).
    if tile >= padded_rows_min and padded_rows_min > 2 * sub:
        tile = max(sub, _round_up(pl.cdiv(padded_rows_min, 2), sub))
    tile = min(tile, padded_rows_min)

    grid_len = pl.cdiv(rows, tile)
    padded_rows = grid_len * tile

    # --- pad to aligned, lane-dense blocks ---
    x2 = x.reshape(rows, hidden)
    if padded_rows != rows or padded_hidden != hidden:
        x2 = jnp.pad(x2, ((0, padded_rows - rows), (0, padded_hidden - hidden)))
    gamma2 = gamma.reshape(1, hidden)
    beta2 = beta.reshape(1, hidden)
    if padded_hidden != hidden:
        gamma2 = jnp.pad(gamma2, ((0, 0), (0, padded_hidden - hidden)))
        beta2 = jnp.pad(beta2, ((0, 0), (0, padded_hidden - hidden)))

    # Raise the scoped VMEM limit to cover double-buffered in+out blocks
    # (v5e default is only 16 MiB, v6e 32 MiB) with headroom for f32 temps.
    in_block = tile * padded_hidden * itemsize
    out_block = tile * padded_hidden * itemsize
    needed = 2 * (in_block + out_block) + 4 * padded_hidden * itemsize + (4 << 20)
    vmem_limit = int(min(vmem_bytes * 3 // 4, max(needed, 32 << 20)))

    kernel = functools.partial(_layernorm_kernel, eps=float(eps),
                               valid_hidden=hidden)

    out2 = pl.pallas_call(
        kernel,
        out_shape=jax.ShapeDtypeStruct((padded_rows, padded_hidden), dtype),
        grid_spec=pltpu.PrefetchScalarGridSpec(
            num_scalar_prefetch=0,
            grid=(grid_len,),
            in_specs=[
                pl.BlockSpec((tile, padded_hidden), lambda i: (i, 0)),
                pl.BlockSpec((1, padded_hidden), lambda i: (0, 0)),
                pl.BlockSpec((1, padded_hidden), lambda i: (0, 0)),
            ],
            out_specs=pl.BlockSpec((tile, padded_hidden), lambda i: (i, 0)),
        ),
        compiler_params=pltpu.CompilerParams(
            dimension_semantics=("parallel",),
            vmem_limit_bytes=vmem_limit,
        ),
    )(x2, gamma2, beta2)

    if padded_rows != rows or padded_hidden != hidden:
        out2 = out2[:rows, :hidden]
    return out2.reshape(orig_shape)


def layer_norm_ref(x, gamma, beta, eps):
    mean = jnp.mean(x, axis=-1, keepdims=True)
    var = jnp.var(x, axis=-1, keepdims=True, ddof=1)  # unbiased, matches torch.var
    x_norm = (x - mean) / jnp.sqrt(var + eps)
    return gamma * x_norm + beta


if __name__ == "__main__":
    batch, seq, hidden = 2, 8, 32
    eps = 1e-5

    key = jax.random.PRNGKey(0)
    x = jax.random.normal(key, (batch, seq, hidden), dtype=jnp.float32)

    # deterministic parameter init matching nn.Parameter(torch.ones/zeros)
    gamma = jnp.ones((hidden,), dtype=jnp.float32)
    beta = jnp.zeros((hidden,), dtype=jnp.float32)

    out = layer_norm(x, gamma, beta, eps)
    out = jax.block_until_ready(out)

    ref = layer_norm_ref(x, gamma, beta, eps)
    assert out.shape == x.shape
    assert jnp.allclose(out, ref, atol=1e-5, rtol=1e-5), "mismatch vs reference"

    print("KERNEL_OK")
</pallas_src>

<mosaic_0001>
module attributes {stable_mosaic.version = 11 : i64} {
  func.func @_layernorm_kernel(%arg0: i32, %arg1: memref<16x128xf32, #tpu.memory_space<vmem>>, %arg2: memref<1x128xf32, #tpu.memory_space<vmem>>, %arg3: memref<1x128xf32, #tpu.memory_space<vmem>>, %arg4: memref<16x128xf32, #tpu.memory_space<vmem>>) attributes {dimension_semantics = [#tpu.dimension_semantics<parallel>], iteration_bounds = array<i64: 1>, scalar_prefetch = 0 : i64, scratch_operands = 0 : i64, tpu.core_type = #tpu.core_type<tc>, window_params = [{transform_indices = @transform_0, window_bounds = array<i64: 16, 128>}, {pipeline_mode = #tpu.pipeline_mode<synchronous>, transform_indices = @transform_1, window_bounds = array<i64: 1, 128>}, {pipeline_mode = #tpu.pipeline_mode<synchronous>, transform_indices = @transform_2, window_bounds = array<i64: 1, 128>}, {transform_indices = @transform_3, window_bounds = array<i64: 16, 128>}]} {
    %c0 = arith.constant 0 : index
    %c0_0 = arith.constant 0 : index
    %0 = vector.load %arg1[%c0, %c0_0] : memref<16x128xf32, #tpu.memory_space<vmem>>, vector<16x128xf32>
    %1 = tpu.iota {dimensions = array<i32: 1>} : vector<16x128xi32>
    %c32_i32 = arith.constant 32 : i32
    %2 = vector.broadcast %c32_i32 : i32 to vector<16x128xi32>
    %3 = arith.cmpi slt, %1, %2 : vector<16x128xi32>
    %cst = arith.constant 0.000000e+00 : f32
    %4 = vector.broadcast %cst : f32 to vector<16x128xf32>
    %5 = arith.select %3, %0, %4 : vector<16x128xi1>, vector<16x128xf32>
    %cst_1 = arith.constant dense<0.000000e+00> : vector<16xf32>
    %6 = vector.multi_reduction <add>, %5, %cst_1 [1] : vector<16x128xf32> to vector<16xf32>
    %7 = vector.shape_cast %6 : vector<16xf32> to vector<16x1xf32>
    %8 = arith.mulf %5, %5 : vector<16x128xf32>
    %cst_2 = arith.constant dense<0.000000e+00> : vector<16xf32>
    %9 = vector.multi_reduction <add>, %8, %cst_2 [1] : vector<16x128xf32> to vector<16xf32>
    %10 = vector.shape_cast %9 : vector<16xf32> to vector<16x1xf32>
    %cst_3 = arith.constant 3.200000e+01 : f32
    %11 = vector.broadcast %cst_3 : f32 to vector<16x1xf32>
    %12 = arith.divf %7, %11 : vector<16x1xf32>
    %cst_4 = arith.constant 3.200000e+01 : f32
    %13 = vector.broadcast %cst_4 : f32 to vector<16x1xf32>
    %14 = arith.mulf %13, %12 : vector<16x1xf32>
    %15 = arith.mulf %14, %12 : vector<16x1xf32>
    %16 = arith.subf %10, %15 : vector<16x1xf32>
    %cst_5 = arith.constant 3.100000e+01 : f32
    %17 = vector.broadcast %cst_5 : f32 to vector<16x1xf32>
    %18 = arith.divf %16, %17 : vector<16x1xf32>
    %cst_6 = arith.constant 0.000000e+00 : f32
    %19 = vector.broadcast %cst_6 : f32 to vector<16x1xf32>
    %20 = arith.maximumf %18, %19 : vector<16x1xf32>
    %cst_7 = arith.constant 9.99999974E-6 : f32
    %21 = vector.broadcast %cst_7 : f32 to vector<16x1xf32>
    %22 = arith.addf %20, %21 : vector<16x1xf32>
    %23 = math.rsqrt %22 : vector<16x1xf32>
    %24 = vector.broadcast %12 : vector<16x1xf32> to vector<16x128xf32>
    %25 = arith.subf %0, %24 : vector<16x128xf32>
    %26 = vector.broadcast %23 : vector<16x1xf32> to vector<16x128xf32>
    %27 = arith.mulf %25, %26 : vector<16x128xf32>
    %c0_8 = arith.constant 0 : index
    %c0_9 = arith.constant 0 : index
    %28 = vector.load %arg2[%c0_8, %c0_9] : memref<1x128xf32, #tpu.memory_space<vmem>>, vector<1x128xf32>
    %c0_10 = arith.constant 0 : index
    %c0_11 = arith.constant 0 : index
    %29 = vector.load %arg3[%c0_10, %c0_11] : memref<1x128xf32, #tpu.memory_space<vmem>>, vector<1x128xf32>
    %30 = vector.broadcast %28 : vector<1x128xf32> to vector<16x128xf32>
    %31 = arith.mulf %30, %27 : vector<16x128xf32>
    %32 = vector.broadcast %29 : vector<1x128xf32> to vector<16x128xf32>
    %33 = arith.addf %31, %32 : vector<16x128xf32>
    %c0_12 = arith.constant 0 : index
    %c0_13 = arith.constant 0 : index
    %34 = vector.load %arg4[%c0_12, %c0_13] : memref<16x128xf32, #tpu.memory_space<vmem>>, vector<16x128xf32>
    tpu.vector_store %arg4[%c0_12, %c0_13], %33 {strides = array<i32>} : memref<16x128xf32, #tpu.memory_space<vmem>>, vector<16x128xf32>,
    return
  }
  func.func @transform_0(%arg0: i32) -> (i32, i32) {
    %c0_i32 = arith.constant 0 : i32
    %c0_i32_0 = arith.constant 0 : i32
    return %arg0, %c0_i32 : i32, i32
  }
  func.func @transform_1(%arg0: i32) -> (i32, i32) {
    %c0_i32 = arith.constant 0 : i32
    %c0_i32_0 = arith.constant 0 : i32
    %c0_i32_1 = arith.constant 0 : i32
    return %c0_i32, %c0_i32_0 : i32, i32
  }
  func.func @transform_2(%arg0: i32) -> (i32, i32) {
    %c0_i32 = arith.constant 0 : i32
    %c0_i32_0 = arith.constant 0 : i32
    %c0_i32_1 = arith.constant 0 : i32
    return %c0_i32, %c0_i32_0 : i32, i32
  }
  func.func @transform_3(%arg0: i32) -> (i32, i32) {
    %c0_i32 = arith.constant 0 : i32
    %c0_i32_0 = arith.constant 0 : i32
    return %arg0, %c0_i32 : i32, i32
  }
}

</mosaic_0001>

<bundles_post_ra>
// kernel: tpu_custom_call.1
= control target key start
LH: loop header
LB: loop body
LE: loop exit
PB: predicated region body
PF: predicated region fallthrough
CT: control target
= control target key end

     0   :  { %8 = vsyncpa [#allocation3], 0  ;;  %s296_s0 = inlined_call_operand.hbm [shape: f32[16,128], index: 0, kind: input, shape index: {}]   ;;  %s297_s1 = inlined_call_operand.hbm [shape: f32[1,128], index: 1, kind: input, shape index: {}]   ;;  %s298_s2 = inlined_call_operand.vmem [shape: f32[1,128], index: 2, kind: input, shape index: {}]   ;;  %s299_s3 = inlined_call_operand.hbm [shape: f32[16,128], index: 3, kind: output, shape index: {}]  }
   0x1   :  { %9 = vsyncpa [#allocation6], 0 }
   0x2   :  { %10 = vsyncpa [#allocation4], 0  ;;  %s15_s14 = sshll.u32 %s296_s0, 4  ;;  %s243_s15 = smov [#allocation2]   ;;  %s16_s14 = int_to_ptr.hbm [resolvable:$true] %s15_s14 }
   0x3   :  { %s17_s16 = sshll.u32 %s243_s15, 4  ;;  %s29_s19 = sshll.u32 %s297_s1, 4  ;;  %s18_s16 = int_to_ptr.vmem [resolvable:$true] %s17_s16  ;;  %s30_s19 = int_to_ptr.hbm [resolvable:$true] %s29_s19 }
   0x4   :  { %s244_s20 = smov 128   ;;  %s245_s21 = smov 8  }
   0x5   :  { %23 = dma.hbm_to_vmem [thread:$0]  %s16_s14, 256, %s18_s16, [#allocation3], %s244_s20, %s244_s20, %s245_s21  }
   0x6   :  { %s246_s22 = smov [#allocation5]  }
   0x7   :  { %s31_s23 = sshll.u32 %s246_s22, 4  ;;  %s32_s23 = int_to_ptr.vmem [resolvable:$true] %s31_s23 }
   0x8   :  { %34 = dma.hbm_to_vmem [thread:$0]  %s30_s19, 16, %s32_s23, [#allocation6]  }
   0x9   :  { %237 = dma.done.wait [#allocation3], 256  }
   0xa   :  { %238 = vsyncadd [#allocation3], 4294967040 }
   0xb   :  { %239 = dma.done.wait [#allocation6], 16  }
   0xc   :  { %240 = vsyncadd [#allocation6], 4294967280  ;;  %v47_v0 = vlaneseq  ;;  %v279_v2 = vld [vmem:[#allocation2] sm:$0xff]  ;;  %v282_v5 = vld [vmem:[#allocation2 + $0x8] sm:$0xff]  ;;  %v247_v8 = vmov 32.0   ;;  %v248_v10 = vmov 31.0  }
   0xd   :  { %157 = vrcp.f32 %v247_v8  ;;  %v155_v49 = vld [vmem:[#allocation5] ss:$0 sm:$0xff]  ;;  %v156_v53 = vld [vmem:[%s298_s2] ss:$0 sm:$0xff]  ;;  %s249_s24 = smov [#allocation7]   ;;  %s134_s28 = sshll.u32 %s299_s3, 4  ;;  %s135_s28 = int_to_ptr.hbm [resolvable:$true] %s134_s28 }
   0xe   :  { %v48_v1 = vand.u32 127, %v47_v0  ;;  %159 = vrcp.f32 %v248_v10  ;;  %s132_s25 = sshll.u32 %s249_s24, 4  ;;  %s133_s25 = int_to_ptr.vmem [resolvable:$true] %s132_s25 }
  0x10   :  { %vm49_vm0 = vcmp.lt.s32.totalorder %v48_v1, 32 }
  0x11   :  { %v50_v3 = vsel %vm49_vm0, %v279_v2, 0.0  ;;  %v51_v6 = vsel %vm49_vm0, %v282_v5, 0.0 }
  0x12   :  { %52 = vadd.xlane.f32.xlu0 %v50_v3  ;;  %v56_v4 = vmul.f32 %v50_v3, %v50_v3  ;;  %v57_v7 = vmul.f32 %v51_v6, %v51_v6 }
  0x13   :  { %v158_v9 = vpop.eup %157 }
  0x14   :  { %58 = vadd.xlane.f32.xlu1 %v56_v4  ;;  %v63_v11 = vmul.f32 32.0, %v158_v9  ;;  %v160_v13 = vpop.eup %159  ;;  %vm67_vm1 = vweird.f32 %v158_v9 }
  0x15   :  { %v78_v15 = vmul.f32 31.0, %v160_v13  ;;  %vm82_vm2 = vweird.f32 %v160_v13 }
  0x16   :  { %v64_v12 = vsub.f32 1.0, %v63_v11 }
  0x17   :  { %v79_v17 = vsub.f32 1.0, %v78_v15 }
  0x18   :  { %v65_v14 = vmul.f32 %v158_v9, %v64_v12 }
  0x19   :  { %v80_v19 = vmul.f32 %v160_v13, %v79_v17 }
  0x1a   :  { %54 = vadd.xlane.f32.xlu0 %v51_v6  ;;  %v66_v16 = vadd.f32 %v158_v9, %v65_v14 }
  0x1b   :  { %v81_v22 = vadd.f32 %v160_v13, %v80_v19 }
  0x1c   :  { %60 = vadd.xlane.f32.xlu1 %v57_v7  ;;  %v68_v18 = vsel %vm67_vm1, %v158_v9, %v66_v16 }
  0x1d   :  { %v83_v26 = vsel %vm82_vm2, %v160_v13, %v81_v22 }
  0x85   :  { %v53_v20 = vpop.xlane.xlu0 %52 }
  0x86   :  { %v69_v21 = vmul.f32 %v68_v18, %v53_v20 }
  0x87   :  { %v59_v23 = vpop.xlane.xlu1 %58 }
  0x88   :  { %v71_v24 = vmul.f32 32.0, %v69_v21  ;;  %v110_v48 = vsub.f32 %v279_v2, %v69_v21 }
  0x8a   :  { %v73_v25 = vmul.f32 %v71_v24, %v69_v21 }
  0x8c   :  { %v75_v27 = vsub.f32 %v59_v23, %v73_v25 }
  0x8d   :  { %v55_v28 = vpop.xlane.xlu0 %54 }
  0x8e   :  { %v84_v29 = vmul.f32 %v83_v26, %v75_v27  ;;  %v70_v30 = vmul.f32 %v68_v18, %v55_v28 }
  0x8f   :  { %v61_v33 = vpop.xlane.xlu1 %60 }
  0x90   :  { %v86_v31 = vmax.f32 %v84_v29, 0.0  ;;  %v72_v32 = vmul.f32 32.0, %v70_v30  ;;  %v111_v59 = vsub.f32 %v282_v5, %v70_v30 }
  0x92   :  { %v88_v34 = vadd.f32 1e-05, %v86_v31  ;;  %v74_v35 = vmul.f32 %v72_v32, %v70_v30 }
  0x94   :  { %161 = vrsqrt.f32 %v88_v34  ;;  %v76_v36 = vsub.f32 %v61_v33, %v74_v35  ;;  %vm96_vm4 = vweird.f32 %v88_v34 }
  0x96   :  { %v85_v37 = vmul.f32 %v83_v26, %v76_v36 }
  0x98   :  { %v87_v38 = vmax.f32 %v85_v37, 0.0 }
  0x9a   :  { %v162_v39 = vpop.eup %161  ;;  %v89_v40 = vadd.f32 1e-05, %v87_v38 }
  0x9b   :  { %v91_v41 = vmul.f32 %v162_v39, %v88_v34  ;;  %vm97_vm3 = vweird.f32 %v162_v39 }
  0x9c   :  { %163 = vrsqrt.f32 %v89_v40  ;;  %vm98_vm5 = vmor %vm96_vm4, %vm97_vm3  ;;  %vm106_vm7 = vweird.f32 %v89_v40 }
  0x9d   :  { %v92_v42 = vmul.f32 %v162_v39, %v91_v41 }
  0x9f   :  { %v93_v43 = vmul.f32 0.5, %v92_v42 }
  0xa1   :  { %v94_v44 = vsub.f32 1.5, %v93_v43 }
  0xa2   :  { %v164_v45 = vpop.eup %163 }
  0xa3   :  { %v95_v46 = vmul.f32 %v162_v39, %v94_v44  ;;  %v101_v47 = vmul.f32 %v164_v45, %v89_v40  ;;  %vm107_vm6 = vweird.f32 %v164_v45 }
  0xa4   :  { %vm108_vm8 = vmor %vm106_vm7, %vm107_vm6 }
  0xa5   :  { %v99_v50 = vsel %vm98_vm5, %v162_v39, %v95_v46  ;;  %v102_v51 = vmul.f32 %v164_v45, %v101_v47 }
  0xa6   :  { %v112_v52 = vmul.f32 %v110_v48, %v99_v50 }
  0xa7   :  { %v103_v54 = vmul.f32 0.5, %v102_v51 }
  0xa8   :  { %v119_v55 = vmul.f32 %v155_v49, %v112_v52 }
  0xa9   :  { %v104_v56 = vsub.f32 1.5, %v103_v54 }
  0xaa   :  { %v124_v57 = vadd.f32 %v156_v53, %v119_v55 }
  0xab   :  { %v105_v58 = vmul.f32 %v164_v45, %v104_v56 }
  0xac   :  { %126 = vst [vmem:[#allocation7] sm:$0xff] %v124_v57 }
  0xad   :  { %v109_v60 = vsel %vm108_vm8, %v164_v45, %v105_v58 }
  0xae   :  { %v113_v61 = vmul.f32 %v111_v59, %v109_v60 }
  0xb0   :  { %v120_v62 = vmul.f32 %v155_v49, %v113_v61 }
  0xb2   :  { %v125_v63 = vadd.f32 %v156_v53, %v120_v62 }
  0xb4   :  { %127 = vst [vmem:[#allocation7 + $0x8] sm:$0xff] %v125_v63 }
  0xb5   :  { %140 = dma.vmem_to_hbm [thread:$0]  %s133_s25, 256, %s135_s28, [#allocation4], %s244_s20, %s244_s20, %s245_s21  }
  0xb6   :  { %241 = dma.done.wait [#allocation4], 256  }
  0xb7   :  { %242 = vsyncadd [#allocation4], 4294967040 }
  0xb8   :  { %145 = vsyncpa [#allocation3], 1 }
  0xb9   :  { %146 = vsyncpa [#allocation6], 1 }
  0xba   :  { %147 = vsyncpa [#allocation4], 1 }

</bundles_post_ra>
